<compile_context>
chip_gen: v7x
topology: tpu7x:2x2x1
jax: 0.10.0
libtpu: 0.0.40
codegen_flags: <defaults>
</compile_context>

<pallas_src>
import jax
import jax.numpy as jnp
from jax.experimental import pallas as pl
from jax.experimental.pallas import tpu as pltpu


def _round_up(a: int, b: int) -> int:
    return ((a + b - 1) // b) * b


def dec_kernel(x_ref, wenc_ref, benc_ref, rhs_ref, bdec_ref, c2_ref,
               q_ref, lat_ref, rec_ref):
    # x_ref:    [TB, D]        f32  (batch tile, cast to bf16 in-kernel)
    # wenc_ref: [D, Lp]        bf16 (zero-padded cols L..Lp)
    # benc_ref: [1, Lp]        f32
    # rhs_ref:  [Lp, D + Cp]   bf16 ([W_dec | centroids^T], zero-padded)
    # bdec_ref: [1, D]         f32
    # c2_ref:   [1, Cp]        f32  (||c||^2; padded clusters = 1e30)
    D = bdec_ref.shape[1]

    # In-kernel bf16 cast: free VPU op, keeps the HBM x stream at 4 B/elem
    # with no separate wrapper-side conversion pass.
    x = x_ref[...].astype(jnp.bfloat16)                                # [TB, D]

    # ---- encoder: latent = x @ W_enc + b_enc (bf16 MXU, f32 accumulate) ----
    z = jnp.dot(x, wenc_ref[...],
                preferred_element_type=jnp.float32) + benc_ref[...]    # [TB, Lp]
    lat_ref[...] = z                                                   # lane-dense store

    # ---- single MXU pass over the merged RHS [W_dec | centroids^T] ---------
    zb = z.astype(jnp.bfloat16)
    full = jnp.dot(zb, rhs_ref[...],
                   preferred_element_type=jnp.float32)                 # [TB, D+Cp]

    # decoder output (bf16 store halves the largest HBM write stream)
    rec = full[:, :D] + bdec_ref[...]                                  # [TB, D] f32
    rec_ref[...] = rec.astype(rec_ref.dtype)

    # ---- Student-t soft assignments (all f32) -------------------------------
    # squared euclidean cdist via ||z||^2 + ||c||^2 - 2 z.c^T
    zc = full[:, D:]                                                   # [TB, Cp]
    z2 = jnp.sum(z * z, axis=-1, keepdims=True)                        # [TB, 1]
    d2 = jnp.maximum(z2 + c2_ref[...] - 2.0 * zc, 0.0)                 # [TB, Cp]

    soft = 1.0 / (1.0 + d2)
    # exact reciprocal: rows of q sum to 1 to ~1e-6
    q_ref[...] = soft * pl.reciprocal(jnp.sum(soft, axis=-1, keepdims=True))


def dec_forward(x_nchw, w_enc, b_enc, w_dec, b_dec, centroids, *,
                tile_b=1024, recon_dtype=jnp.bfloat16):
    N = x_nchw.shape[0]
    D, L = w_enc.shape
    C = centroids.shape[0]

    # Flatten NCHW -> (N, C*H*W), row-major (same as torch x.view(N, -1)).
    # Keep f32: the bf16 cast happens inside the kernel.
    x2d = x_nchw.reshape(N, -1).astype(jnp.float32)
    assert x2d.shape[1] == D

    # ---- batch tile selection (kernel is HBM-bound) -------------------------
    # Big tiles amortize the ~0.35us/step overhead; multiple of 16 (clean bf16
    # sublane packing); capped to ~half the batch (256-aligned) so the single
    # "parallel" grid axis has >= 2 steps and both v7x TensorCores get work.
    if N > 256:
        cap = _round_up((N + 1) // 2, 256)
    else:
        cap = _round_up(max(N, 1), 16)
    TILE_B = max(16, min(_round_up(int(tile_b), 16), cap))
    N_pad = _round_up(N, TILE_B)
    if N_pad != N:
        # Zero rows; sliced off after the kernel.  For production batch sizes
        # prefer N divisible by TILE_B so the trailing [:N] slices are no-ops.
        x2d = jnp.pad(x2d, ((0, N_pad - N), (0, 0)))

    # ---- lane-dense layouts --------------------------------------------------
    # Latent dim padded to 128 (unmasked latent stores, full MXU N-dim);
    # cluster dim padded to 128 (lane-dense q).  Padded latent dims are zero
    # everywhere, padded centroids get ||c||^2 = 1e30 (f32 path only!).
    L_pad = _round_up(max(L, 1), 128)
    C_pad = _round_up(max(C, 1), 128)

    w_enc_p = jnp.zeros((D, L_pad), jnp.bfloat16).at[:, :L].set(
        w_enc.astype(jnp.bfloat16))
    b_enc_p = jnp.zeros((1, L_pad), jnp.float32).at[:, :L].set(
        b_enc.reshape(1, L).astype(jnp.float32))

    cent_f32 = centroids.astype(jnp.float32)
    # Merged RHS for the second MXU pass: [W_dec | centroids^T] in bf16.
    rhs_cat = jnp.zeros((L_pad, D + C_pad), jnp.bfloat16)
    rhs_cat = rhs_cat.at[:L, :D].set(w_dec.astype(jnp.bfloat16))
    rhs_cat = rhs_cat.at[:L, D:D + C].set(cent_f32.T.astype(jnp.bfloat16))

    b_dec_f = b_dec.reshape(1, D).astype(jnp.float32)
    c2 = jnp.full((1, C_pad), 1e30, jnp.float32).at[:, :C].set(
        jnp.sum(cent_f32 * cent_f32, axis=-1)[None, :])

    grid = (N_pad // TILE_B,)

    q_pad, latent_p, recon = pl.pallas_call(
        dec_kernel,
        out_shape=(
            jax.ShapeDtypeStruct((N_pad, C_pad), jnp.float32),   # q (padded)
            jax.ShapeDtypeStruct((N_pad, L_pad), jnp.float32),   # latent (padded)
            jax.ShapeDtypeStruct((N_pad, D), recon_dtype),       # reconstructed
        ),
        grid=grid,
        in_specs=[
            pl.BlockSpec((TILE_B, D), lambda i: (i, 0)),         # x tile (pipelined)
            pl.BlockSpec((D, L_pad), lambda i: (0, 0)),          # W_enc   (resident)
            pl.BlockSpec((1, L_pad), lambda i: (0, 0)),          # b_enc
            pl.BlockSpec((L_pad, D + C_pad), lambda i: (0, 0)),  # [W_dec | c^T]
            pl.BlockSpec((1, D), lambda i: (0, 0)),              # b_dec
            pl.BlockSpec((1, C_pad), lambda i: (0, 0)),          # ||c||^2
        ],
        out_specs=(
            pl.BlockSpec((TILE_B, C_pad), lambda i: (i, 0)),
            pl.BlockSpec((TILE_B, L_pad), lambda i: (i, 0)),
            pl.BlockSpec((TILE_B, D), lambda i: (i, 0)),
        ),
        compiler_params=pltpu.CompilerParams(
            dimension_semantics=("parallel",),
            # double-buffered 1024-row tiles (~24 MiB working set) need more
            # than v5e's 16 MiB / v7x's 32 MiB default scoped VMEM limit.
            vmem_limit_bytes=48 * 1024 * 1024),
    )(x2d, w_enc_p, b_enc_p, rhs_cat, b_dec_f, c2)

    return q_pad[:N, :C], latent_p[:N, :L], recon[:N]


def dec_reference(x_nchw, w_enc, b_enc, w_dec, b_dec, centroids):
    """Pure-JAX f32 reference mirroring the PyTorch forward."""
    N = x_nchw.shape[0]
    x2d = x_nchw.reshape(N, -1).astype(jnp.float32)
    z = x2d @ w_enc + b_enc                              # latent_space
    rec = z @ w_dec + b_dec                              # reconstructed
    diff = z[:, None, :] - centroids[None, :, :]
    d2 = jnp.sum(diff * diff, axis=-1)                   # cdist(...)**2
    soft = 1.0 / (1.0 + d2)
    q = soft / jnp.sum(soft, axis=1, keepdims=True)
    return q, z, rec


if __name__ == "__main__":
    # Small shapes consistent with the module: NCHW image input, latent=32,
    # n_clusters=10.
    N, Cch, H, W = 2, 4, 16, 16
    D = Cch * H * W            # 1024 flattened input features
    L = 32                     # latent_space_dims
    K = 10                     # n_clusters

    key = jax.random.PRNGKey(0)
    kx, kwe, kbe, kwd, kbd, kc = jax.random.split(key, 6)

    x = jax.random.normal(kx, (N, Cch, H, W), dtype=jnp.float32)

    # Deterministic synthetic autoencoder parameters (linear encoder/decoder).
    # TODO(synk): the PyTorch module wraps an arbitrary `autoencoder`; only a
    # linear encoder/decoder is fused here.
    w_enc = jax.random.normal(kwe, (D, L), dtype=jnp.float32) * (1.0 / jnp.sqrt(D))
    b_enc = jax.random.normal(kbe, (1, L), dtype=jnp.float32) * 0.01
    w_dec = jax.random.normal(kwd, (L, D), dtype=jnp.float32) * (1.0 / jnp.sqrt(L))
    b_dec = jax.random.normal(kbd, (1, D), dtype=jnp.float32) * 0.01

    # clustering_layer: Xavier-normal init, shape (n_clusters, latent_space_dims)
    xavier_std = jnp.sqrt(2.0 / (K + L))
    centroids = jax.random.normal(kc, (K, L), dtype=jnp.float32) * xavier_std

    q, latent, recon = dec_forward(x, w_enc, b_enc, w_dec, b_dec, centroids)
    jax.block_until_ready((q, latent, recon))

    q_ref, lat_ref, rec_ref = dec_reference(x, w_enc, b_enc, w_dec, b_dec, centroids)

    assert q.shape == (N, K) and latent.shape == (N, L) and recon.shape == (N, D)
    # Tolerances account for bf16 MXU operands / bf16 recon output
    # (accumulation and all Student-t math stay f32).
    assert jnp.allclose(latent, lat_ref, atol=3e-2, rtol=2e-2)
    assert jnp.allclose(recon.astype(jnp.float32), rec_ref, atol=8e-2, rtol=3e-2)
    assert jnp.allclose(q, q_ref, atol=3e-3, rtol=2e-2)
    # rows of q sum to 1 (exact reciprocal used for the normalization)
    assert jnp.allclose(jnp.sum(q, axis=1), jnp.ones((N,)), atol=1e-4)

    print("KERNEL_OK")
</pallas_src>

<mosaic_0001>
module attributes {stable_mosaic.version = 11 : i64} {
  func.func @dec_kernel(%arg0: i32, %arg1: memref<16x1024xf32, #tpu.memory_space<vmem>>, %arg2: memref<1024x128xbf16, #tpu.memory_space<vmem>>, %arg3: memref<1x128xf32, #tpu.memory_space<vmem>>, %arg4: memref<128x1152xbf16, #tpu.memory_space<vmem>>, %arg5: memref<1x1024xf32, #tpu.memory_space<vmem>>, %arg6: memref<1x128xf32, #tpu.memory_space<vmem>>, %arg7: memref<16x128xf32, #tpu.memory_space<vmem>>, %arg8: memref<16x128xf32, #tpu.memory_space<vmem>>, %arg9: memref<16x1024xbf16, #tpu.memory_space<vmem>>) attributes {dimension_semantics = [#tpu.dimension_semantics<parallel>], iteration_bounds = array<i64: 1>, scalar_prefetch = 0 : i64, scratch_operands = 0 : i64, tpu.core_type = #tpu.core_type<tc>, window_params = [{transform_indices = @transform_0, window_bounds = array<i64: 16, 1024>}, {pipeline_mode = #tpu.pipeline_mode<synchronous>, transform_indices = @transform_1, window_bounds = array<i64: 1024, 128>}, {pipeline_mode = #tpu.pipeline_mode<synchronous>, transform_indices = @transform_2, window_bounds = array<i64: 1, 128>}, {pipeline_mode = #tpu.pipeline_mode<synchronous>, transform_indices = @transform_3, window_bounds = array<i64: 128, 1152>}, {pipeline_mode = #tpu.pipeline_mode<synchronous>, transform_indices = @transform_4, window_bounds = array<i64: 1, 1024>}, {pipeline_mode = #tpu.pipeline_mode<synchronous>, transform_indices = @transform_5, window_bounds = array<i64: 1, 128>}, {transform_indices = @transform_6, window_bounds = array<i64: 16, 128>}, {transform_indices = @transform_7, window_bounds = array<i64: 16, 128>}, {transform_indices = @transform_8, window_bounds = array<i64: 16, 1024>}]} {
    %c0 = arith.constant 0 : index
    %c0_0 = arith.constant 0 : index
    %0 = vector.load %arg1[%c0, %c0_0] : memref<16x1024xf32, #tpu.memory_space<vmem>>, vector<16x1024xf32>
    %1 = arith.truncf %0 : vector<16x1024xf32> to vector<16x1024xbf16>
    %c0_1 = arith.constant 0 : index
    %c0_2 = arith.constant 0 : index
    %2 = vector.load %arg2[%c0_1, %c0_2] : memref<1024x128xbf16, #tpu.memory_space<vmem>>, vector<1024x128xbf16>
    %cst = arith.constant dense<0.000000e+00> : vector<16x128xf32>
    %3 = tpu.matmul %1, %2, %cst {dimension_numbers = #tpu.dot_dimension_numbers<[1], [0], [0], [1], [0, 0, 1, 1], [], []>} : vector<16x1024xbf16>, vector<1024x128xbf16>, vector<16x128xf32> -> vector<16x128xf32>
    %c0_3 = arith.constant 0 : index
    %c0_4 = arith.constant 0 : index
    %4 = vector.load %arg3[%c0_3, %c0_4] : memref<1x128xf32, #tpu.memory_space<vmem>>, vector<1x128xf32>
    %5 = vector.broadcast %4 : vector<1x128xf32> to vector<16x128xf32>
    %6 = arith.addf %3, %5 : vector<16x128xf32>
    %c0_5 = arith.constant 0 : index
    %c0_6 = arith.constant 0 : index
    %7 = vector.load %arg8[%c0_5, %c0_6] : memref<16x128xf32, #tpu.memory_space<vmem>>, vector<16x128xf32>
    tpu.vector_store %arg8[%c0_5, %c0_6], %6 {strides = array<i32>} : memref<16x128xf32, #tpu.memory_space<vmem>>, vector<16x128xf32>,
    %8 = arith.truncf %6 : vector<16x128xf32> to vector<16x128xbf16>
    %c0_7 = arith.constant 0 : index
    %c0_8 = arith.constant 0 : index
    %9 = vector.load %arg4[%c0_7, %c0_8] : memref<128x1152xbf16, #tpu.memory_space<vmem>>, vector<128x1152xbf16>
    %cst_9 = arith.constant dense<0.000000e+00> : vector<16x1152xf32>
    %10 = tpu.matmul %8, %9, %cst_9 {dimension_numbers = #tpu.dot_dimension_numbers<[1], [0], [0], [1], [0, 0, 1, 1], [], []>} : vector<16x128xbf16>, vector<128x1152xbf16>, vector<16x1152xf32> -> vector<16x1152xf32>
    %11 = vector.extract_strided_slice %10 {offsets = [0, 0], sizes = [16, 1024], strides = [1, 1]} : vector<16x1152xf32> to vector<16x1024xf32>
    %c0_10 = arith.constant 0 : index
    %c0_11 = arith.constant 0 : index
    %12 = vector.load %arg5[%c0_10, %c0_11] : memref<1x1024xf32, #tpu.memory_space<vmem>>, vector<1x1024xf32>
    %13 = vector.broadcast %12 : vector<1x1024xf32> to vector<16x1024xf32>
    %14 = arith.addf %11, %13 : vector<16x1024xf32>
    %15 = arith.truncf %14 : vector<16x1024xf32> to vector<16x1024xbf16>
    %c0_12 = arith.constant 0 : index
    %c0_13 = arith.constant 0 : index
    %16 = vector.load %arg9[%c0_12, %c0_13] : memref<16x1024xbf16, #tpu.memory_space<vmem>>, vector<16x1024xbf16>
    tpu.vector_store %arg9[%c0_12, %c0_13], %15 {strides = array<i32>} : memref<16x1024xbf16, #tpu.memory_space<vmem>>, vector<16x1024xbf16>,
    %17 = vector.extract_strided_slice %10 {offsets = [0, 1024], sizes = [16, 128], strides = [1, 1]} : vector<16x1152xf32> to vector<16x128xf32>
    %18 = arith.mulf %6, %6 : vector<16x128xf32>
    %cst_14 = arith.constant dense<0.000000e+00> : vector<16xf32>
    %19 = vector.multi_reduction <add>, %18, %cst_14 [1] : vector<16x128xf32> to vector<16xf32>
    %20 = vector.shape_cast %19 : vector<16xf32> to vector<16x1xf32>
    %c0_15 = arith.constant 0 : index
    %c0_16 = arith.constant 0 : index
    %21 = vector.load %arg6[%c0_15, %c0_16] : memref<1x128xf32, #tpu.memory_space<vmem>>, vector<1x128xf32>
    %22 = vector.broadcast %20 : vector<16x1xf32> to vector<16x128xf32>
    %23 = vector.broadcast %21 : vector<1x128xf32> to vector<16x128xf32>
    %24 = arith.addf %22, %23 : vector<16x128xf32>
    %cst_17 = arith.constant 2.000000e+00 : f32
    %25 = vector.broadcast %cst_17 : f32 to vector<16x128xf32>
    %26 = arith.mulf %25, %17 : vector<16x128xf32>
    %27 = arith.subf %24, %26 : vector<16x128xf32>
    %cst_18 = arith.constant 0.000000e+00 : f32
    %28 = vector.broadcast %cst_18 : f32 to vector<16x128xf32>
    %29 = arith.maximumf %27, %28 : vector<16x128xf32>
    %cst_19 = arith.constant 1.000000e+00 : f32
    %30 = vector.broadcast %cst_19 : f32 to vector<16x128xf32>
    %31 = arith.addf %30, %29 : vector<16x128xf32>
    %cst_20 = arith.constant 1.000000e+00 : f32
    %32 = vector.broadcast %cst_20 : f32 to vector<16x128xf32>
    %33 = arith.divf %32, %31 : vector<16x128xf32>
    %cst_21 = arith.constant dense<0.000000e+00> : vector<16xf32>
    %34 = vector.multi_reduction <add>, %33, %cst_21 [1] : vector<16x128xf32> to vector<16xf32>
    %35 = vector.shape_cast %34 : vector<16xf32> to vector<16x1xf32>
    %36 = tpu.reciprocal %35 : vector<16x1xf32> -> vector<16x1xf32>
    %37 = vector.broadcast %36 : vector<16x1xf32> to vector<16x128xf32>
    %38 = arith.mulf %33, %37 : vector<16x128xf32>
    %c0_22 = arith.constant 0 : index
    %c0_23 = arith.constant 0 : index
    %39 = vector.load %arg7[%c0_22, %c0_23] : memref<16x128xf32, #tpu.memory_space<vmem>>, vector<16x128xf32>
    tpu.vector_store %arg7[%c0_22, %c0_23], %38 {strides = array<i32>} : memref<16x128xf32, #tpu.memory_space<vmem>>, vector<16x128xf32>,
    return
  }
  func.func @transform_0(%arg0: i32) -> (i32, i32) {
    %c0_i32 = arith.constant 0 : i32
    %c0_i32_0 = arith.constant 0 : i32
    return %arg0, %c0_i32 : i32, i32
  }
  func.func @transform_1(%arg0: i32) -> (i32, i32) {
    %c0_i32 = arith.constant 0 : i32
    %c0_i32_0 = arith.constant 0 : i32
    %c0_i32_1 = arith.constant 0 : i32
    return %c0_i32, %c0_i32_0 : i32, i32
  }
  func.func @transform_2(%arg0: i32) -> (i32, i32) {
    %c0_i32 = arith.constant 0 : i32
    %c0_i32_0 = arith.constant 0 : i32
    %c0_i32_1 = arith.constant 0 : i32
    return %c0_i32, %c0_i32_0 : i32, i32
  }
  func.func @transform_3(%arg0: i32) -> (i32, i32) {
    %c0_i32 = arith.constant 0 : i32
    %c0_i32_0 = arith.constant 0 : i32
    %c0_i32_1 = arith.constant 0 : i32
    return %c0_i32, %c0_i32_0 : i32, i32
  }
  func.func @transform_4(%arg0: i32) -> (i32, i32) {
    %c0_i32 = arith.constant 0 : i32
    %c0_i32_0 = arith.constant 0 : i32
    %c0_i32_1 = arith.constant 0 : i32
    return %c0_i32, %c0_i32_0 : i32, i32
  }
  func.func @transform_5(%arg0: i32) -> (i32, i32) {
    %c0_i32 = arith.constant 0 : i32
    %c0_i32_0 = arith.constant 0 : i32
    %c0_i32_1 = arith.constant 0 : i32
    return %c0_i32, %c0_i32_0 : i32, i32
  }
  func.func @transform_6(%arg0: i32) -> (i32, i32) {
    %c0_i32 = arith.constant 0 : i32
    %c0_i32_0 = arith.constant 0 : i32
    return %arg0, %c0_i32 : i32, i32
  }
  func.func @transform_7(%arg0: i32) -> (i32, i32) {
    %c0_i32 = arith.constant 0 : i32
    %c0_i32_0 = arith.constant 0 : i32
    return %arg0, %c0_i32 : i32, i32
  }
  func.func @transform_8(%arg0: i32) -> (i32, i32) {
    %c0_i32 = arith.constant 0 : i32
    %c0_i32_0 = arith.constant 0 : i32
    return %arg0, %c0_i32 : i32, i32
  }
}

</mosaic_0001>

<bundles_post_ra>
// kernel: tpu_custom_call.1
= control target key start
LH: loop header
LB: loop body
LE: loop exit
PB: predicated region body
PF: predicated region fallthrough
CT: control target
= control target key end

     0   :  { %14 = vsyncpa [#allocation3], 0  ;;  %s2403_s0 = inlined_call_operand.hbm [shape: f32[16,1024], index: 0, kind: input, shape index: {}]   ;;  %s2404_s1 = inlined_call_operand.hbm [shape: bf16[1024,128], index: 1, kind: input, shape index: {}]   ;;  %s2405_s2 = inlined_call_operand.vmem [shape: f32[1,128], index: 2, kind: input, shape index: {}]   ;;  %s2406_s3 = inlined_call_operand.hbm [shape: bf16[128,1152], index: 3, kind: input, shape index: {}]   ;;  %s2407_s4 = inlined_call_operand.vmem [shape: f32[1,1024], index: 4, kind: input, shape index: {}]   ;;  %s2408_s5 = inlined_call_operand.vmem [shape: f32[1,128], index: 5, kind: input, shape index: {}]   ;;  %s2409_s6 = inlined_call_operand.hbm [shape: f32[16,128], index: 6, kind: output, shape index: {0}]   ;;  %s2410_s7 = inlined_call_operand.hbm [shape: f32[16,128], index: 7, kind: output, shape index: {1}]   ;;  %s2411_s8 = inlined_call_operand.hbm [shape: bf16[16,1024], index: 8, kind: output, shape index: {2}]  }
   0x1   :  { %15 = vsyncpa [#allocation6], 0 }
   0x2   :  { %16 = vsyncpa [#allocation4], 0 }
   0x3   :  { %17 = vsyncpa [#allocation10], 0  ;;  %s2246_s27 = smov [#allocation5]   ;;  %s2106_s9 = scalar_lea.hbm %s2404_s1, 8192 }
   0x4   :  { %s35_s28 = sshll.u32 %s2246_s27, 4  ;;  %p2107_p0 = scmp.ne.s32.totalorder %s2404_s1, %s2106_s9  ;;  %s36_s28 = int_to_ptr.vmem [resolvable:$true] %s35_s28 }
   0x5   :  { %p2110_p1 = scmp.lt.u32.totalorder %s2106_s9, %s2404_s1 }
   0x7   :  { %p2112_p2 = pnand %p2110_p1, %p2107_p0 }
   0x9   :  { %2115 = shalt.err (!%p2112_p2)
}
   0xa   :  { %s2116_s14 = scalar_lea.vmem %s36_s28, 8192  ;;  %p2121_p4 = scmp.lt.s32.totalorder %s36_s28, %s36_s28 }
   0xb   :  { %p2117_p3 = scmp.ne.s32.totalorder %s36_s28, %s2116_s14  ;;  %p2122_p5 = scmp.lt.s32.totalorder %s2116_s14, %s2116_s14 }
   0xd   :  { %p2123_p6 = por %p2122_p5, %p2121_p4 }
   0xf   :  { %p2124_p7 = pnand %p2123_p6, %p2117_p3 }
  0x11   :  { %2127 = shalt.err (!%p2124_p7)
}
  0x12   :  { %s2247_s15 = smov 64   ;;  %s2248_s16 = smov 4  }
  0x13   :  { %41 = dma.hbm_to_vmem [thread:$0]  %s2404_s1, 8192, %s36_s28, [#allocation6], %s2247_s15, %s2247_s15, %s2248_s16  }
  0x14   :  { %s2249_s19 = smov [#allocation2]   ;;  %s2128_s23 = scalar_lea.hbm %s2403_s0, 2048 }
  0x15   :  { %s23_s20 = sshll.u32 %s2249_s19, 4  ;;  %p2129_p8 = scmp.ne.s32.totalorder %s2403_s0, %s2128_s23  ;;  %s24_s20 = int_to_ptr.vmem [resolvable:$true] %s23_s20 }
  0x16   :  { %p2132_p9 = scmp.lt.u32.totalorder %s2128_s23, %s2403_s0 }
  0x18   :  { %p2134_p10 = pnand %p2132_p9, %p2129_p8 }
  0x1a   :  { %2137 = shalt.err (!%p2134_p10)
}
  0x1b   :  { %s2138_s29 = scalar_lea.vmem %s24_s20, 2048  ;;  %p2143_p12 = scmp.lt.s32.totalorder %s24_s20, %s24_s20 }
  0x1c   :  { %p2139_p11 = scmp.ne.s32.totalorder %s24_s20, %s2138_s29  ;;  %p2144_p13 = scmp.lt.s32.totalorder %s2138_s29, %s2138_s29 }
  0x1e   :  { %p2145_p0 = por %p2144_p13, %p2143_p12 }
  0x20   :  { %p2146_p1 = pnand %p2145_p0, %p2139_p11 }
  0x22   :  { %2149 = shalt.err (!%p2146_p1)
}
  0x23   :  { %s2250_s1 = smov 1024   ;;  %s2251_s9 = smov [#allocation7]  }
  0x24   :  { %29 = dma.hbm_to_vmem [thread:$0]  %s2403_s0, 2048, %s24_s20, [#allocation3], %s2250_s1, %s2250_s1, %s2247_s15  }
  0x25   :  { %s49_s10 = sshll.u32 %s2251_s9, 4  ;;  %s2150_s13 = scalar_lea.hbm %s2406_s3, 9216  ;;  %s50_s10 = int_to_ptr.vmem [resolvable:$true] %s49_s10 }
  0x26   :  { %p2151_p2 = scmp.ne.s32.totalorder %s2406_s3, %s2150_s13  ;;  %p2154_p3 = scmp.lt.u32.totalorder %s2150_s13, %s2406_s3 }
  0x28   :  { %p2156_p4 = pnand %p2154_p3, %p2151_p2 }
  0x2a   :  { %2159 = shalt.err (!%p2156_p4)
}
  0x2b   :  { %s2160_s19 = scalar_lea.vmem %s50_s10, 9216  ;;  %p2165_p6 = scmp.lt.s32.totalorder %s50_s10, %s50_s10 }
  0x2c   :  { %p2161_p5 = scmp.ne.s32.totalorder %s50_s10, %s2160_s19  ;;  %p2166_p7 = scmp.lt.s32.totalorder %s2160_s19, %s2160_s19 }
  0x2e   :  { %p2167_p8 = por %p2166_p7, %p2165_p6 }
  0x30   :  { %p2168_p9 = pnand %p2167_p8, %p2161_p5 }
  0x32   :  { %2171 = shalt.err (!%p2168_p9)
}
  0x33   :  { %s2252_s0 = smov 576   ;;  %s2253_s15 = smov 36  }
  0x34   :  { %55 = dma.hbm_to_vmem [thread:$0]  %s2406_s3, 9216, %s50_s10, [#allocation6], %s2252_s0, %s2252_s0, %s2253_s15  }
  0x35   :  { %2238 = dma.done.wait [#allocation3], 2048  }
  0x36   :  { %2239 = vsyncadd [#allocation3], 4294965248 }
  0x37   :  { %2240 = dma.done.wait [#allocation6], 17408  }
  0x38   :  { %2241 = vsyncadd [#allocation6], 4294949888  ;;  %v1930_v0 = vld [vmem:[#allocation5 + $0x40] sm:$0xff]   ;;  %v1934_v4 = vld [vmem:[#allocation5 + $0x48] sm:$0xff]   ;;  %vm2256_vm0 = vmmov 0  }
  0x39   :  { %v1931_v1 = vld [vmem:[#allocation5 + $0xc0] sm:$0xff]   ;;  %1795 = vmatprep.subr.bf16.mxu0 %v1930_v0  ;;  %v1935_v5 = vld [vmem:[#allocation5 + $0xc8] sm:$0xff]   ;;  %v1938_v8 = vld [vmem:[#allocation5 + $0x50] sm:$0xff]  }
  0x3a   :  { %v1932_v2 = vld [vmem:[#allocation5] sm:$0xff]   ;;  %1817 = vmatprep.subr.bf16.mxu1 %v1931_v1  ;;  %v1936_v6 = vld [vmem:[#allocation5 + $0x8] sm:$0xff]   ;;  %v1939_v9 = vld [vmem:[#allocation5 + $0xd0] sm:$0xff]  }
  0x3b   :  { %v1933_v3 = vld [vmem:[#allocation5 + $0x80] sm:$0xff]   ;;  %1796 = vmatpush3.bf16.msra.mxu0 %v1932_v2  ;;  %v1937_v7 = vld [vmem:[#allocation5 + $0x88] sm:$0xff]   ;;  %v1940_v10 = vld [vmem:[#allocation5 + $0x10] sm:$0xff]  }
  0x3c   :  { %1818 = vmatpush3.bf16.msra.mxu1 %v1933_v3  ;;  %1797 = vmatprep.subr.bf16.mxu0 %v1934_v4  ;;  %v1941_v11 = vld [vmem:[#allocation5 + $0x90] sm:$0xff]   ;;  %v1942_v12 = vld [vmem:[#allocation5 + $0x58] sm:$0xff]   ;;  %v1946_v16 = vld [vmem:[#allocation5 + $0x60] sm:$0xff]  }
  0x3d   :  { %1819 = vmatprep.subr.bf16.mxu1 %v1935_v5  ;;  %v1943_v13 = vld [vmem:[#allocation5 + $0xd8] sm:$0xff]   ;;  %v1947_v17 = vld [vmem:[#allocation5 + $0xe0] sm:$0xff]   ;;  %v1950_v20 = vld [vmem:[#allocation5 + $0x68] sm:$0xff]  }
  0x3e   :  { %v1944_v14 = vld [vmem:[#allocation5 + $0x18] sm:$0xff]   ;;  %v1948_v18 = vld [vmem:[#allocation5 + $0x20] sm:$0xff]   ;;  %v1951_v21 = vld [vmem:[#allocation5 + $0xe8] sm:$0xff]  }
  0x3f   :  { %1798 = vmatpush3.bf16.msra.mxu0 %v1936_v6  ;;  %v1945_v15 = vld [vmem:[#allocation5 + $0x98] sm:$0xff]   ;;  %v1949_v19 = vld [vmem:[#allocation5 + $0xa0] sm:$0xff]   ;;  %v1952_v22 = vld [vmem:[#allocation5 + $0x28] sm:$0xff]  }
  0x40   :  { %1820 = vmatpush3.bf16.msra.mxu1 %v1937_v7  ;;  %1799 = vmatprep.subr.bf16.mxu0 %v1938_v8  ;;  %v1953_v23 = vld [vmem:[#allocation5 + $0xa8] sm:$0xff]   ;;  %v1954_v24 = vld [vmem:[#allocation5 + $0x70] sm:$0xff]   ;;  %v1958_v28 = vld [vmem:[#allocation5 + $0x78] sm:$0xff]  }
  0x41   :  { %1821 = vmatprep.subr.bf16.mxu1 %v1939_v9  ;;  %v1955_v25 = vld [vmem:[#allocation5 + $0xf0] sm:$0xff]   ;;  %v1959_v29 = vld [vmem:[#allocation5 + $0xf8] sm:$0xff]   ;;  %v71_v32 = vld [vmem:[#allocation2 + $0x8] sm:$0xff] }
  0x42   :  { %v1956_v26 = vld [vmem:[#allocation5 + $0x30] sm:$0xff]   ;;  %v1960_v30 = vld [vmem:[#allocation5 + $0x38] sm:$0xff]   ;;  %v79_v33 = vld [vmem:[#allocation2 + $0x48] sm:$0xff] }
  0x43   :  { %1800 = vmatpush3.bf16.msra.mxu0 %v1940_v10  ;;  %v1957_v27 = vld [vmem:[#allocation5 + $0xb0] sm:$0xff]   ;;  %v1961_v31 = vld [vmem:[#allocation5 + $0xb8] sm:$0xff]   ;;  %v87_v35 = vpack.c.bf16 %v79_v33, %v71_v32  ;;  %v70_v37 = vld [vmem:[#allocation2] sm:$0xff] }
  0x44   :  { %1822 = vmatpush3.bf16.msra.mxu1 %v1941_v11  ;;  %1801 = vmatprep.subr.bf16.mxu0 %v1942_v12  ;;  %v73_v34 = vld [vmem:[#allocation2 + $0x18] sm:$0xff]  ;;  %v78_v38 = vld [vmem:[#allocation2 + $0x40] sm:$0xff]  ;;  %v72_v41 = vld [vmem:[#allocation2 + $0x10] sm:$0xff] }
  0x45   :  { %1823 = vmatprep.subr.bf16.mxu1 %v1943_v13  ;;  %v81_v36 = vld [vmem:[#allocation2 + $0x58] sm:$0xff]  ;;  %v86_v40 = vpack.c.bf16 %v78_v38, %v70_v37  ;;  %v80_v42 = vld [vmem:[#allocation2 + $0x50] sm:$0xff]  ;;  %645 = vmatprep.mubr.bf16.mxu0 %v87_v35  ;;  %v1962_v44 = vld [vmem:[#allocation5 + $0x140] sm:$0xff]  }
  0x46   :  { %v89_v39 = vpack.c.bf16 %v81_v36, %v73_v34  ;;  %v88_v43 = vpack.c.bf16 %v80_v42, %v72_v41  ;;  %v1963_v45 = vld [vmem:[#allocation5 + $0x1c0] sm:$0xff]   ;;  %v1966_v48 = vld [vmem:[#allocation5 + $0x148] sm:$0xff]   ;;  %v1970_v52 = vld [vmem:[#allocation5 + $0x150] sm:$0xff]  }
  0x47   :  { %1802 = vmatpush3.bf16.msra.mxu0 %v1944_v14  ;;  %v1964_v46 = vld [vmem:[#allocation5 + $0x100] sm:$0xff]   ;;  %v1967_v49 = vld [vmem:[#allocation5 + $0x1c8] sm:$0xff]   ;;  %v1971_v53 = vld [vmem:[#allocation5 + $0x1d0] sm:$0xff]  }
  0x48   :  { %1824 = vmatpush3.bf16.msra.mxu1 %v1945_v15  ;;  %1803 = vmatprep.subr.bf16.mxu0 %v1946_v16  ;;  %v1965_v47 = vld [vmem:[#allocation5 + $0x180] sm:$0xff]   ;;  %v1968_v50 = vld [vmem:[#allocation5 + $0x108] sm:$0xff]   ;;  %v1972_v54 = vld [vmem:[#allocation5 + $0x110] sm:$0xff]  }
  0x49   :  { %1825 = vmatprep.subr.bf16.mxu1 %v1947_v17  ;;  %686 = vmatprep.mubr.bf16.mxu1 %v89_v39  ;;  %v1969_v51 = vld [vmem:[#allocation5 + $0x188] sm:$0xff]   ;;  %v1973_v55 = vld [vmem:[#allocation5 + $0x190] sm:$0xff]   ;;  %v1974_v56 = vld [vmem:[#allocation5 + $0x158] sm:$0xff]  }
  0x4a   :  { %v1975_v57 = vld [vmem:[#allocation5 + $0x1d8] sm:$0xff]   ;;  %v1978_v60 = vld [vmem:[#allocation5 + $0x160] sm:$0xff]   ;;  %v1982_v0 = vld [vmem:[#allocation5 + $0x168] sm:$0xff]  }
  0x4b   :  { %1804 = vmatpush3.bf16.msra.mxu0 %v1948_v18  ;;  %v1976_v58 = vld [vmem:[#allocation5 + $0x118] sm:$0xff]   ;;  %v1979_v61 = vld [vmem:[#allocation5 + $0x1e0] sm:$0xff]   ;;  %v1983_v1 = vld [vmem:[#allocation5 + $0x1e8] sm:$0xff]  }
  0x4c   :  { %1826 = vmatpush3.bf16.msra.mxu1 %v1949_v19  ;;  %1805 = vmatprep.subr.bf16.mxu0 %v1950_v20  ;;  %v1977_v59 = vld [vmem:[#allocation5 + $0x198] sm:$0xff]   ;;  %v1980_v62 = vld [vmem:[#allocation5 + $0x120] sm:$0xff]   ;;  %v1984_v2 = vld [vmem:[#allocation5 + $0x128] sm:$0xff]  }
  0x4d   :  { %1827 = vmatprep.subr.bf16.mxu1 %v1951_v21  ;;  %v1981_v63 = vld [vmem:[#allocation5 + $0x1a0] sm:$0xff]   ;;  %v1985_v3 = vld [vmem:[#allocation5 + $0x1a8] sm:$0xff]   ;;  %v1986_v4 = vld [vmem:[#allocation5 + $0x170] sm:$0xff]  }
  0x4e   :  { %v1987_v5 = vld [vmem:[#allocation5 + $0x1f0] sm:$0xff]   ;;  %v1990_v8 = vld [vmem:[#allocation5 + $0x178] sm:$0xff]   ;;  %v75_v12 = vld [vmem:[#allocation2 + $0x28] sm:$0xff] }
  0x4f   :  { %1806 = vmatpush3.bf16.msra.mxu0 %v1952_v22  ;;  %v1988_v6 = vld [vmem:[#allocation5 + $0x130] sm:$0xff]   ;;  %v1991_v9 = vld [vmem:[#allocation5 + $0x1f8] sm:$0xff]   ;;  %v83_v13 = vld [vmem:[#allocation2 + $0x68] sm:$0xff] }
  0x50   :  { %1828 = vmatpush3.bf16.msra.mxu1 %v1953_v23  ;;  %1807 = vmatprep.subr.bf16.mxu0 %v1954_v24  ;;  %v1989_v7 = vld [vmem:[#allocation5 + $0x1b0] sm:$0xff]   ;;  %v1992_v10 = vld [vmem:[#allocation5 + $0x138] sm:$0xff]   ;;  %v91_v16 = vpack.c.bf16 %v83_v13, %v75_v12  ;;  %v74_v18 = vld [vmem:[#allocation2 + $0x20] sm:$0xff] }
  0x51   :  { %1829 = vmatprep.subr.bf16.mxu1 %v1955_v25  ;;  %v1993_v11 = vld [vmem:[#allocation5 + $0x1b8] sm:$0xff]   ;;  %v82_v19 = vld [vmem:[#allocation2 + $0x60] sm:$0xff]  ;;  %v76_v20 = vld [vmem:[#allocation2 + $0x30] sm:$0xff] }
  0x52   :  { %v77_v14 = vld [vmem:[#allocation2 + $0x38] sm:$0xff]  ;;  %v90_v21 = vpack.c.bf16 %v82_v19, %v74_v18  ;;  %v84_v22 = vld [vmem:[#allocation2 + $0x70] sm:$0xff]  ;;  %v1994_v24 = vld [vmem:[#allocation7] ss:$36 sps:$4 sm:$0xff]  }
  0x53   :  { %1808 = vmatpush3.bf16.msra.mxu0 %v1956_v26  ;;  %v85_v15 = vld [vmem:[#allocation2 + $0x78] sm:$0xff]  ;;  %v92_v23 = vpack.c.bf16 %v84_v22, %v76_v20  ;;  %v1996_v25 = vld [vmem:[#allocation7 + $0x4] ss:$36 sps:$4 sm:$0xff]   ;;  %v2006_v34 = vld [vmem:[#allocation7 + $0x90] ss:$36 sps:$4 sm:$0xff]  }
  0x54   :  { %1830 = vmatpush3.bf16.msra.mxu1 %v1957_v27  ;;  %1809 = vmatprep.subr.bf16.mxu0 %v1958_v28  ;;  %v93_v17 = vpack.c.bf16 %v85_v15, %v77_v14  ;;  %v1997_v26 = vld [vmem:[#allocation7 + $0x8] ss:$36 sps:$4 sm:$0xff]   ;;  %v2008_v32 = vld [vmem:[#allocation7 + $0x94] ss:$36 sps:$4 sm:$0xff]   ;;  %v2011_v33 = vld [vmem:[#allocation7 + $0x9c] ss:$36 sps:$4 sm:$0xff]  }
  0x55   :  { %1831 = vmatprep.subr.bf16.mxu1 %v1959_v29  ;;  %v1999_v27 = vld [vmem:[#allocation7 + $0xc] ss:$36 sps:$4 sm:$0xff]   ;;  %v2005_v29 = vld [vmem:[#allocation7 + $0x54] ss:$36 sps:$4 sm:$0xff]   ;;  %v2014_v36 = vld [vmem:[#allocation7 + $0xdc] ss:$36 sps:$4 sm:$0xff]  }
  0x56   :  { %v2002_v28 = vld [vmem:[#allocation7 + $0x4c] ss:$36 sps:$4 sm:$0xff]   ;;  %v2009_v35 = vld [vmem:[#allocation7 + $0x98] ss:$36 sps:$4 sm:$0xff]   ;;  %v2017_v37 = vld [vmem:[#allocation7 + $0xe4] ss:$36 sps:$4 sm:$0xff]  }
  0x57   :  { %1810 = vmatpush3.bf16.msra.mxu0 %v1960_v30  ;;  %v2000_v30 = vld [vmem:[#allocation7 + $0x48] ss:$36 sps:$4 sm:$0xff]   ;;  %v2012_v38 = vld [vmem:[#allocation7 + $0xd8] ss:$36 sps:$4 sm:$0xff]   ;;  %v2015_v39 = vld [vmem:[#allocation7 + $0xe0] ss:$36 sps:$4 sm:$0xff]  }
  0x58   :  { %1832 = vmatpush3.bf16.msra.mxu1 %v1961_v31  ;;  %1839 = vmatprep.subr.bf16.mxu0 %v1962_v44  ;;  %v2003_v31 = vld [vmem:[#allocation7 + $0x50] ss:$36 sps:$4 sm:$0xff]   ;;  %v2018_v42 = vld [vmem:[#allocation7 + $0x120] ss:$36 sps:$4 sm:$0xff]  }
  0x59   :  { %1861 = vmatprep.subr.bf16.mxu1 %v1963_v45  ;;  %v2023_v41 = vld [vmem:[#allocation7 + $0x12c] ss:$36 sps:$4 sm:$0xff]   ;;  %v2029_v45 = vld [vmem:[#allocation7 + $0x174] ss:$36 sps:$4 sm:$0xff]  }
  0x5a   :  { %646 = vmatmul.mubr.bf16.vlgmr.msra.gmra.mrb[0].mxu0 %v86_v40  ;;  %v2020_v40 = vld [vmem:[#allocation7 + $0x124] ss:$36 sps:$4 sm:$0xff]   ;;  %v2026_v44 = vld [vmem:[#allocation7 + $0x16c] ss:$36 sps:$4 sm:$0xff]  }
  0x5b   :  { %687 = vmatmul.mubr.bf16.vlgmr.msra.gmra.mrb[0].mxu1 %v88_v43  ;;  %1840 = vmatpush3.bf16.msra.mxu0 %v1964_v46  ;;  %v2021_v43 = vld [vmem:[#allocation7 + $0x128] ss:$36 sps:$4 sm:$0xff]  }
  0x5c   :  { %1862 = vmatpush3.bf16.msra.mxu1 %v1965_v47  ;;  %1841 = vmatprep.subr.bf16.mxu0 %v1966_v48  ;;  %v2024_v46 = vld [vmem:[#allocation7 + $0x168] ss:$36 sps:$4 sm:$0xff]   ;;  %v2027_v47 = vld [vmem:[#allocation7 + $0x170] ss:$36 sps:$4 sm:$0xff]  }
  0x5d   :  { %1863 = vmatprep.subr.bf16.mxu1 %v1967_v49  ;;  %727 = vmatprep.mubr.bf16.mxu0 %v91_v16  ;;  %v2032_v48 = vld [vmem:[#allocation7 + $0x1b4] ss:$36 sps:$4 sm:$0xff]   ;;  %v2035_v49 = vld [vmem:[#allocation7 + $0x1bc] ss:$36 sps:$4 sm:$0xff]  }
  0x5e   :  { %768 = vmatprep.mubr.bf16.mxu1 %v93_v17 }
  0x5f   :  { %1842 = vmatpush3.bf16.msra.mxu0 %v1968_v50  ;;  %v2030_v50 = vld [vmem:[#allocation7 + $0x1b0] ss:$36 sps:$4 sm:$0xff]  }
  0x60   :  { %1864 = vmatpush3.bf16.msra.mxu1 %v1969_v51  ;;  %1843 = vmatprep.subr.bf16.mxu0 %v1970_v52  ;;  %v2033_v51 = vld [vmem:[#allocation7 + $0x1b8] ss:$36 sps:$4 sm:$0xff]  }
  0x61   :  { %1865 = vmatprep.subr.bf16.mxu1 %v1971_v53  ;;  %v2038_v52 = vld [vmem:[#allocation7 + $0x1fc] ss:$36 sps:$4 sm:$0xff]   ;;  %v2041_v53 = vld [vmem:[#allocation7 + $0x204] ss:$36 sps:$4 sm:$0xff]  }
  0x63   :  { %1844 = vmatpush3.bf16.msra.mxu0 %v1972_v54  ;;  %v2036_v54 = vld [vmem:[#allocation7 + $0x1f8] ss:$36 sps:$4 sm:$0xff]  }
  0x64   :  { %1866 = vmatpush3.bf16.msra.mxu1 %v1973_v55  ;;  %1845 = vmatprep.subr.bf16.mxu0 %v1974_v56  ;;  %v2039_v55 = vld [vmem:[#allocation7 + $0x200] ss:$36 sps:$4 sm:$0xff]   ;;  %v2044_v56 = vld [vmem:[#allocation7 + $0x14] ss:$36 sps:$4 sm:$0xff]  }
  0x65   :  { %1867 = vmatprep.subr.bf16.mxu1 %v1975_v57  ;;  %v2254_v57 = vmov 0  }
  0x67   :  { %1846 = vmatpush3.bf16.msra.mxu0 %v1976_v58  ;;  %v2047_v58 = vld [vmem:[#allocation7 + $0x1c] ss:$36 sps:$4 sm:$0xff]  }
  0x68   :  { %1868 = vmatpush3.bf16.msra.mxu1 %v1977_v59  ;;  %1847 = vmatprep.subr.bf16.mxu0 %v1978_v60 }
  0x69   :  { %1869 = vmatprep.subr.bf16.mxu1 %v1979_v61  ;;  %v1641_v61 = vld [vmem:[%s2405_s2] ss:$0 sm:$0xff] }
  0x6b   :  { %1848 = vmatpush3.bf16.msra.mxu0 %v1980_v62 }
  0x6c   :  { %1870 = vmatpush3.bf16.msra.mxu1 %v1981_v63  ;;  %1849 = vmatprep.subr.bf16.mxu0 %v1982_v0 }
  0x6d   :  { %1871 = vmatprep.subr.bf16.mxu1 %v1983_v1 }
  0x6f   :  { %1850 = vmatpush3.bf16.msra.mxu0 %v1984_v2 }
  0x70   :  { %1872 = vmatpush3.bf16.msra.mxu1 %v1985_v3  ;;  %1851 = vmatprep.subr.bf16.mxu0 %v1986_v4 }
  0x71   :  { %1873 = vmatprep.subr.bf16.mxu1 %v1987_v5 }
  0x73   :  { %1852 = vmatpush3.bf16.msra.mxu0 %v1988_v6 }
  0x74   :  { %1874 = vmatpush3.bf16.msra.mxu1 %v1989_v7  ;;  %1853 = vmatprep.subr.bf16.mxu0 %v1990_v8 }
  0x75   :  { %1875 = vmatprep.subr.bf16.mxu1 %v1991_v9 }
  0x77   :  { %1854 = vmatpush3.bf16.msra.mxu0 %v1992_v10 }
  0x78   :  { %1876 = vmatpush3.bf16.msra.mxu1 %v1993_v11  ;;  %1228 = vmatprep.subr.bf16.mxu0 %v1996_v25 }
  0x79   :  { %1271 = vmatprep.subr.bf16.mxu1 %v1999_v27 }
  0x7a   :  { %728 = vmatmul.mubr.bf16.vlgmr.msra.gmra.mrb[4].mxu0 %v90_v21 }
  0x7b   :  { %769 = vmatmul.mubr.bf16.vlgmr.msra.gmra.mrb[4].mxu1 %v92_v23  ;;  %1229 = vmatpush1.bf16.msra.mxu0 %v1994_v24 }
  0x7c   :  { %1272 = vmatpush1.bf16.msra.mxu1 %v1997_v26  ;;  %1230 = vmatprep.subr.bf16.mxu0 %v2002_v28 }
  0x7d   :  { %1273 = vmatprep.subr.bf16.mxu1 %v2005_v29  ;;  %1260 = vmatprep.mubr.bf16.mxu0 %v2254_v57  ;;  %v2042_v29 = vld [vmem:[#allocation7 + $0x10] ss:$36 sps:$4 sm:$0xff]  }
  0x7e   :  { %1303 = vmatprep.mubr.bf16.mxu1 %v2254_v57 }
  0x7f   :  { %1231 = vmatpush1.bf16.msra.mxu0 %v2000_v30  ;;  %v2045_v30 = vld [vmem:[#allocation7 + $0x18] ss:$36 sps:$4 sm:$0xff]  }
  0x80   :  { %1274 = vmatpush1.bf16.msra.mxu1 %v2003_v31  ;;  %1232 = vmatprep.subr.bf16.mxu0 %v2008_v32  ;;  %v2050_v32 = vld [vmem:[#allocation7 + $0x5c] ss:$36 sps:$4 sm:$0xff]  }
  0x81   :  { %1275 = vmatprep.subr.bf16.mxu1 %v2011_v33  ;;  %v2053_v33 = vld [vmem:[#allocation7 + $0x64] ss:$36 sps:$4 sm:$0xff]  }
  0x83   :  { %1233 = vmatpush1.bf16.msra.mxu0 %v2006_v34 }
  0x84   :  { %1276 = vmatpush1.bf16.msra.mxu1 %v2009_v35  ;;  %1234 = vmatprep.subr.bf16.mxu0 %v2014_v36  ;;  %v2048_v35 = vld [vmem:[#allocation7 + $0x58] ss:$36 sps:$4 sm:$0xff]   ;;  %v2051_v36 = vld [vmem:[#allocation7 + $0x60] ss:$36 sps:$4 sm:$0xff]  }
  0x85   :  { %1277 = vmatprep.subr.bf16.mxu1 %v2017_v37  ;;  %v2056_v37 = vld [vmem:[#allocation7 + $0xa4] ss:$36 sps:$4 sm:$0xff]  }
  0x87   :  { %1235 = vmatpush1.bf16.msra.mxu0 %v2012_v38  ;;  %v2059_v38 = vld [vmem:[#allocation7 + $0xac] ss:$36 sps:$4 sm:$0xff]  }
  0x88   :  { %1278 = vmatpush1.bf16.msra.mxu1 %v2015_v39  ;;  %1236 = vmatprep.subr.bf16.mxu0 %v2020_v40  ;;  %v2054_v39 = vld [vmem:[#allocation7 + $0xa0] ss:$36 sps:$4 sm:$0xff]   ;;  %v2057_v40 = vld [vmem:[#allocation7 + $0xa8] ss:$36 sps:$4 sm:$0xff]  }
  0x89   :  { %1279 = vmatprep.subr.bf16.mxu1 %v2023_v41  ;;  %v2062_v41 = vld [vmem:[#allocation7 + $0xec] ss:$36 sps:$4 sm:$0xff]  }
  0x8b   :  { %1237 = vmatpush1.bf16.msra.mxu0 %v2018_v42  ;;  %v2065_v42 = vld [vmem:[#allocation7 + $0xf4] ss:$36 sps:$4 sm:$0xff]  }
  0x8c   :  { %1280 = vmatpush1.bf16.msra.mxu1 %v2021_v43  ;;  %1238 = vmatprep.subr.bf16.mxu0 %v2026_v44  ;;  %v2060_v43 = vld [vmem:[#allocation7 + $0xe8] ss:$36 sps:$4 sm:$0xff]   ;;  %v2063_v44 = vld [vmem:[#allocation7 + $0xf0] ss:$36 sps:$4 sm:$0xff]  }
  0x8d   :  { %1281 = vmatprep.subr.bf16.mxu1 %v2029_v45  ;;  %v2068_v45 = vld [vmem:[#allocation7 + $0x134] ss:$36 sps:$4 sm:$0xff]  }
  0x8f   :  { %1239 = vmatpush1.bf16.msra.mxu0 %v2024_v46  ;;  %v2071_v46 = vld [vmem:[#allocation7 + $0x13c] ss:$36 sps:$4 sm:$0xff]  }
  0x90   :  { %1282 = vmatpush1.bf16.msra.mxu1 %v2027_v47  ;;  %1240 = vmatprep.subr.bf16.mxu0 %v2032_v48  ;;  %v2066_v47 = vld [vmem:[#allocation7 + $0x130] ss:$36 sps:$4 sm:$0xff]   ;;  %v2069_v48 = vld [vmem:[#allocation7 + $0x138] ss:$36 sps:$4 sm:$0xff]  }
  0x91   :  { %1283 = vmatprep.subr.bf16.mxu1 %v2035_v49  ;;  %v2074_v49 = vld [vmem:[#allocation7 + $0x17c] ss:$36 sps:$4 sm:$0xff]  }
  0x93   :  { %1241 = vmatpush1.bf16.msra.mxu0 %v2030_v50  ;;  %v2077_v50 = vld [vmem:[#allocation7 + $0x184] ss:$36 sps:$4 sm:$0xff]  }
  0x94   :  { %1284 = vmatpush1.bf16.msra.mxu1 %v2033_v51  ;;  %1242 = vmatprep.subr.bf16.mxu0 %v2038_v52  ;;  %v2072_v51 = vld [vmem:[#allocation7 + $0x178] ss:$36 sps:$4 sm:$0xff]   ;;  %v2075_v52 = vld [vmem:[#allocation7 + $0x180] ss:$36 sps:$4 sm:$0xff]  }
  0x95   :  { %1285 = vmatprep.subr.bf16.mxu1 %v2041_v53  ;;  %v2080_v53 = vld [vmem:[#allocation7 + $0x1c4] ss:$36 sps:$4 sm:$0xff]  }
  0x97   :  { %1243 = vmatpush1.bf16.msra.mxu0 %v2036_v54  ;;  %v2083_v54 = vld [vmem:[#allocation7 + $0x1cc] ss:$36 sps:$4 sm:$0xff]  }
  0x98   :  { %1286 = vmatpush1.bf16.msra.mxu1 %v2039_v55  ;;  %1314 = vmatprep.subr.bf16.mxu0 %v2044_v56  ;;  %v2078_v55 = vld [vmem:[#allocation7 + $0x1c0] ss:$36 sps:$4 sm:$0xff]   ;;  %v2081_v56 = vld [vmem:[#allocation7 + $0x1c8] ss:$36 sps:$4 sm:$0xff]  }
  0x99   :  { %1357 = vmatprep.subr.bf16.mxu1 %v2047_v58  ;;  %v2089_v58 = vld [vmem:[#allocation7 + $0x214] ss:$36 sps:$4 sm:$0xff]  }
 0x12d   :  { %v1811_v59 = vpop.f32.mrb[0].mxu0 }
 0x12e   :  { %v1833_v60 = vpop.f32.mrb[0].mxu1  ;;  %v1812_v62 = vpop.f32.mrb[1].mxu0 }
 0x12f   :  { %v1813_v63 = vadd.f32 %v1812_v62, %v1811_v59  ;;  %v1834_v0 = vpop.f32.mrb[1].mxu1  ;;  %v1814_v1 = vpop.f32.mrb[2].mxu0  ;;  %v2084_v59 = vld [vmem:[#allocation7 + $0x208] ss:$36 sps:$4 sm:$0xff]   ;;  %v2255_v62 = vmov 0.0  }
 0x130   :  { %v1835_v2 = vadd.f32 %v1834_v0, %v1833_v60  ;;  %v1836_v3 = vpop.f32.mrb[2].mxu1  ;;  %v1815_v4 = vpop.f32.mrb[3].mxu0  ;;  %v2087_v60 = vld [vmem:[#allocation7 + $0x210] ss:$36 sps:$4 sm:$0xff]  }
 0x131   :  { %v648_v5 = vadd.f32 %v1813_v63, %v1641_v61  ;;  %v1816_v6 = vadd.f32 %v1815_v4, %v1814_v1  ;;  %v1837_v7 = vpop.f32.mrb[3].mxu1  ;;  %v2091_v63 = vld [vmem:[#allocation7 + $0x68] ss:$36 sps:$4 sm:$0xff]   ;;  %v2092_v0 = vld [vmem:[#allocation7 + $0xb0] ss:$36 sps:$4 sm:$0xff]  }
 0x132   :  { %v1838_v8 = vadd.f32 %v1837_v7, %v1836_v3  ;;  %v2093_v1 = vld [vmem:[#allocation7 + $0xf8] ss:$36 sps:$4 sm:$0xff]   ;;  %v2095_v3 = vld [vmem:[#allocation7 + $0x188] ss:$36 sps:$4 sm:$0xff]   ;;  %v2096_v4 = vld [vmem:[#allocation7 + $0x1d0] ss:$36 sps:$4 sm:$0xff]  }
 0x133   :  { %v689_v9 = vadd.f32 %v1835_v2, %v648_v5  ;;  %v651_v10 = vadd.f32 %v1816_v6, %v1641_v61  ;;  %v2090_v61 = vld [vmem:[#allocation7 + $0x20] ss:$36 sps:$4 sm:$0xff]   ;;  %v2097_v5 = vld [vmem:[#allocation7 + $0x218] ss:$36 sps:$4 sm:$0xff]   ;;  %v1443_v6 = vlaneseq }
 0x134   :  { %v2094_v2 = vld [vmem:[#allocation7 + $0x140] ss:$36 sps:$4 sm:$0xff]  }
 0x135   :  { %v692_v11 = vadd.f32 %v1838_v8, %v651_v10  ;;  %v1444_v7 = vshrl.u32 %v1443_v6, 7  ;;  %v1441_v10 = vld [vmem:[%s2407_s4] sm:$0xff] }
 0x137   :  { %v1445_v8 = vsub.s32 0, %v1444_v7 }
 0x14d   :  { %v1855_v12 = vpop.f32.mrb[4].mxu0 }
 0x14e   :  { %v1877_v13 = vpop.f32.mrb[4].mxu1  ;;  %v1856_v14 = vpop.f32.mrb[5].mxu0 }
 0x14f   :  { %v1857_v15 = vadd.f32 %v1856_v14, %v1855_v12  ;;  %v1878_v16 = vpop.f32.mrb[5].mxu1  ;;  %v1858_v17 = vpop.f32.mrb[6].mxu0  ;;  %v1457_v12 = vsub.s32 3, %v1444_v7 }
 0x150   :  { %v1879_v18 = vadd.f32 %v1878_v16, %v1877_v13  ;;  %v1880_v19 = vpop.f32.mrb[6].mxu1  ;;  %v1859_v20 = vpop.f32.mrb[7].mxu0  ;;  %v1446_v13 = vrot.slane %v1441_v10, %v1445_v8 }
 0x151   :  { %v730_v21 = vadd.f32 %v1857_v15, %v689_v9  ;;  %v1860_v22 = vadd.f32 %v1859_v20, %v1858_v17  ;;  %v1881_v23 = vpop.f32.mrb[7].mxu1  ;;  %v1453_v9 = vsub.s32 2, %v1444_v7  ;;  %v1458_v16 = vrot.slane %v1441_v10, %v1457_v12 }
 0x152   :  { %v1882_v24 = vadd.f32 %v1881_v23, %v1880_v19 }
 0x153   :  { %v771_v25 = vadd.f32 %v1879_v18, %v730_v21  ;;  %v733_v26 = vadd.f32 %v1860_v22, %v692_v11  ;;  %v1449_v11 = vsub.s32 1, %v1444_v7  ;;  %v1454_v14 = vrot.slane %v1441_v10, %v1453_v9 }
 0x155   :  { %777 = vst [vmem:[#allocation9] sm:$0xff] %v771_v25  ;;  %v774_v27 = vadd.f32 %v1882_v24, %v733_v26  ;;  %v1555_v28 = vmul.f32 %v771_v25, %v771_v25  ;;  %v1450_v15 = vrot.slane %v1441_v10, %v1449_v11 }
 0x157   :  { %778 = vst [vmem:[#allocation9 + $0x8] sm:$0xff] %v774_v27  ;;  %v2348_v31 = vpack.c.bf16 %v774_v27, %v771_v25  ;;  %1557 = vadd.xlane.f32.xlu0 %v1555_v28  ;;  %v1556_v34 = vmul.f32 %v774_v27, %v774_v27 }
 0x159   :  { %1261 = vmatmul.mubr.bf16.vlgmr.msra.gmra.mrb[8].mxu0 %v2348_v31  ;;  %1304 = vmatmul.mubr.bf16.vlgmr.msra.gmra.mrb[8].mxu1 %v2348_v31 }
 0x15a   :  { %1315 = vmatpush1.bf16.msra.mxu0 %v2042_v29  ;;  %1358 = vmatpush1.bf16.msra.mxu1 %v2045_v30 }
 0x15b   :  { %1559 = vadd.xlane.f32.xlu0 %v1556_v34  ;;  %1316 = vmatprep.subr.bf16.mxu0 %v2050_v32 }
 0x15c   :  { %1359 = vmatprep.subr.bf16.mxu1 %v2053_v33  ;;  %1346 = vmatprep.mubr.bf16.mxu0 %v2254_v57 }
 0x15d   :  { %1389 = vmatprep.mubr.bf16.mxu1 %v2254_v57  ;;  %v2086_v57 = vld [vmem:[#allocation7 + $0x20c] ss:$36 sps:$4 sm:$0xff]  }
 0x15e   :  { %1317 = vmatpush1.bf16.msra.mxu0 %v2048_v35  ;;  %1360 = vmatpush1.bf16.msra.mxu1 %v2051_v36 }
 0x15f   :  { %1318 = vmatprep.subr.bf16.mxu0 %v2056_v37  ;;  %1361 = vmatprep.subr.bf16.mxu1 %v2059_v38  ;;  %v1461_v37 = vsub.s32 4, %v1444_v7  ;;  %v1469_v38 = vsub.s32 6, %v1444_v7 }
 0x162   :  { %1319 = vmatpush1.bf16.msra.mxu0 %v2054_v39  ;;  %1362 = vmatpush1.bf16.msra.mxu1 %v2057_v40  ;;  %v1465_v39 = vsub.s32 5, %v1444_v7  ;;  %v1473_v40 = vsub.s32 7, %v1444_v7 }
 0x163   :  { %1320 = vmatprep.subr.bf16.mxu0 %v2062_v41  ;;  %1363 = vmatprep.subr.bf16.mxu1 %v2065_v42  ;;  %v1462_v41 = vrot.slane %v1441_v10, %v1461_v37  ;;  %v1470_v42 = vrot.slane %v1441_v10, %v1469_v38 }
 0x166   :  { %1321 = vmatpush1.bf16.msra.mxu0 %v2060_v43  ;;  %1364 = vmatpush1.bf16.msra.mxu1 %v2063_v44  ;;  %v1466_v43 = vrot.slane %v1441_v10, %v1465_v39  ;;  %v1474_v44 = vrot.slane %v1441_v10, %v1473_v40 }
 0x167   :  { %1322 = vmatprep.subr.bf16.mxu0 %v2068_v45  ;;  %1365 = vmatprep.subr.bf16.mxu1 %v2071_v46 }
 0x16a   :  { %1323 = vmatpush1.bf16.msra.mxu0 %v2066_v47  ;;  %1366 = vmatpush1.bf16.msra.mxu1 %v2069_v48 }
 0x16b   :  { %1324 = vmatprep.subr.bf16.mxu0 %v2074_v49  ;;  %1367 = vmatprep.subr.bf16.mxu1 %v2077_v50 }
 0x16e   :  { %1325 = vmatpush1.bf16.msra.mxu0 %v2072_v51  ;;  %1368 = vmatpush1.bf16.msra.mxu1 %v2075_v52 }
 0x16f   :  { %1326 = vmatprep.subr.bf16.mxu0 %v2080_v53  ;;  %1369 = vmatprep.subr.bf16.mxu1 %v2083_v54 }
 0x172   :  { %1327 = vmatpush1.bf16.msra.mxu0 %v2078_v55  ;;  %1370 = vmatpush1.bf16.msra.mxu1 %v2081_v56 }
 0x173   :  { %1328 = vmatprep.subr.bf16.mxu0 %v2086_v57  ;;  %1371 = vmatprep.subr.bf16.mxu1 %v2089_v58 }
 0x176   :  { %1329 = vmatpush1.bf16.msra.mxu0 %v2084_v59  ;;  %1372 = vmatpush1.bf16.msra.mxu1 %v2087_v60 }
 0x177   :  { %1892 = vmatprep.subr.bf16.mxu0 %v2255_v62 }
 0x179   :  { %1347 = vmatmul.mubr.bf16.vlgmr.msra.gmra.mrb[12].mxu0 %v2348_v31  ;;  %1390 = vmatmul.mubr.bf16.vlgmr.msra.gmra.mrb[12].mxu1 %v2348_v31 }
 0x17a   :  { %1893 = vmatpush3.bf16.msra.mxu0 %v2090_v61  ;;  %1908 = vmatprep.mubr.msk.bf16.mxu0 %vm2256_vm0, %v2255_v62 }
 0x17b   :  { %1894 = vmatprep.subr.bf16.mxu0 %v2255_v62 }
 0x17e   :  { %1895 = vmatpush3.bf16.msra.mxu0 %v2091_v63 }
 0x17f   :  { %1896 = vmatprep.subr.bf16.mxu0 %v2255_v62 }
 0x182   :  { %1897 = vmatpush3.bf16.msra.mxu0 %v2092_v0 }
 0x183   :  { %1898 = vmatprep.subr.bf16.mxu0 %v2255_v62 }
 0x186   :  { %1899 = vmatpush3.bf16.msra.mxu0 %v2093_v1 }
 0x187   :  { %1900 = vmatprep.subr.bf16.mxu0 %v2255_v62 }
 0x18a   :  { %1901 = vmatpush3.bf16.msra.mxu0 %v2094_v2  ;;  %v1786_v2 = vld [vmem:[%s2408_s5] ss:$0 sm:$0xff]  ;;  %s2257_s5 = smov [#allocation9]  }
 0x18b   :  { %1902 = vmatprep.subr.bf16.mxu0 %v2255_v62  ;;  %s1609_s25 = sshll.u32 %s2257_s5, 4  ;;  %s1610_s25 = int_to_ptr.vmem [resolvable:$true] %s1609_s25 }
 0x18c   :  { %s2172_s26 = scalar_lea.vmem %s1610_s25, 256  ;;  %p2177_p11 = scmp.lt.s32.totalorder %s1610_s25, %s1610_s25 }
 0x18d   :  { %p2173_p10 = scmp.ne.s32.totalorder %s1610_s25, %s2172_s26  ;;  %p2178_p12 = scmp.lt.s32.totalorder %s2172_s26, %s2172_s26 }
 0x18e   :  { %1903 = vmatpush3.bf16.msra.mxu0 %v2095_v3 }
 0x18f   :  { %1904 = vmatprep.subr.bf16.mxu0 %v2255_v62  ;;  %p2179_p13 = por %p2178_p12, %p2177_p11 }
 0x191   :  { %p2180_p0 = pnand %p2179_p13, %p2173_p10 }
 0x192   :  { %1905 = vmatpush3.bf16.msra.mxu0 %v2096_v4 }
 0x193   :  { %1906 = vmatprep.subr.bf16.mxu0 %v2255_v62 }
 0x196   :  { %1907 = vmatpush3.bf16.msra.mxu0 %v2097_v5 }
 0x199   :  { %1909 = vmatmul.mubr.bf16.vlgmr.msra.gmra.mrb[16].mxu0 %v2348_v31 }
 0x1e4   :  { %v1558_v1 = vpop.xlane.xlu0 %1557 }
 0x1e5   :  { %v1568_v5 = vadd.f32 %v1786_v2, %v1558_v1 }
 0x1e8   :  { %v1560_v3 = vpop.xlane.xlu0 %1559 }
 0x1e9   :  { %v1569_v9 = vadd.f32 %v1786_v2, %v1560_v3 }
 0x22c   :  { %v1262_v17 = vpop.f32.mrb[8].mxu0  ;;  %v1305_v18 = vpop.f32.mrb[8].mxu1 }
 0x22d   :  { %v1483_v19 = vadd.f32 %v1446_v13, %v1262_v17  ;;  %v1485_v20 = vadd.f32 %v1454_v14, %v1305_v18  ;;  %v1264_v21 = vpop.f32.mrb[9].mxu0  ;;  %v1307_v22 = vpop.f32.mrb[9].mxu1 }
 0x22e   :  { %v1484_v23 = vadd.f32 %v1450_v15, %v1264_v21  ;;  %v1486_v24 = vadd.f32 %v1458_v16, %v1307_v22  ;;  %v1266_v25 = vpop.f32.mrb[10].mxu0  ;;  %v1309_v26 = vpop.f32.mrb[10].mxu1 }
 0x22f   :  { %v1491_v27 = vadd.f32 %v1446_v13, %v1266_v25  ;;  %v1493_v28 = vadd.f32 %v1454_v14, %v1309_v26  ;;  %v1268_v29 = vpop.f32.mrb[11].mxu0  ;;  %v1311_v30 = vpop.f32.mrb[11].mxu1 }
 0x230   :  { %v1787_v31 = vpack.c.bf16 %v1484_v23, %v1483_v19  ;;  %v1788_v32 = vpack.c.bf16 %v1486_v24, %v1485_v20  ;;  %v1492_v33 = vadd.f32 %v1450_v15, %v1268_v29  ;;  %v1494_v34 = vadd.f32 %v1458_v16, %v1311_v30 }
 0x232   :  { %1547 = vst [vmem:[#allocation11] sm:$0xff] %v1787_v31  ;;  %1548 = vst [vmem:[#allocation11 + $0x8] sm:$0xff] %v1788_v32  ;;  %v1791_v35 = vpack.c.bf16 %v1492_v33, %v1491_v27  ;;  %v1792_v36 = vpack.c.bf16 %v1494_v34, %v1493_v28 }
 0x234   :  { %1551 = vst [vmem:[#allocation11 + $0x20] sm:$0xff] %v1791_v35  ;;  %1552 = vst [vmem:[#allocation11 + $0x28] sm:$0xff] %v1792_v36 }
 0x24c   :  { %v1348_v45 = vpop.f32.mrb[12].mxu0  ;;  %v1391_v46 = vpop.f32.mrb[12].mxu1 }
 0x24d   :  { %v1487_v47 = vadd.f32 %v1462_v41, %v1348_v45  ;;  %v1489_v48 = vadd.f32 %v1470_v42, %v1391_v46  ;;  %v1350_v49 = vpop.f32.mrb[13].mxu0  ;;  %v1393_v50 = vpop.f32.mrb[13].mxu1 }
 0x24e   :  { %v1488_v51 = vadd.f32 %v1466_v43, %v1350_v49  ;;  %v1490_v52 = vadd.f32 %v1474_v44, %v1393_v50  ;;  %v1352_v53 = vpop.f32.mrb[14].mxu0  ;;  %v1395_v54 = vpop.f32.mrb[14].mxu1 }
 0x24f   :  { %v1495_v55 = vadd.f32 %v1462_v41, %v1352_v53  ;;  %v1497_v56 = vadd.f32 %v1470_v42, %v1395_v54  ;;  %v1354_v57 = vpop.f32.mrb[15].mxu0  ;;  %v1397_v58 = vpop.f32.mrb[15].mxu1 }
 0x250   :  { %v1789_v59 = vpack.c.bf16 %v1488_v51, %v1487_v47  ;;  %v1790_v60 = vpack.c.bf16 %v1490_v52, %v1489_v48  ;;  %v1496_v61 = vadd.f32 %v1466_v43, %v1354_v57  ;;  %v1498_v62 = vadd.f32 %v1474_v44, %v1397_v58 }
 0x252   :  { %1549 = vst [vmem:[#allocation11 + $0x10] sm:$0xff] %v1789_v59  ;;  %1550 = vst [vmem:[#allocation11 + $0x18] sm:$0xff] %v1790_v60  ;;  %v1793_v63 = vpack.c.bf16 %v1496_v61, %v1495_v55  ;;  %v1794_v0 = vpack.c.bf16 %v1498_v62, %v1497_v56 }
 0x254   :  { %1553 = vst [vmem:[#allocation11 + $0x30] sm:$0xff] %v1793_v63  ;;  %1554 = vst [vmem:[#allocation11 + $0x38] sm:$0xff] %v1794_v0 }
 0x26c   :  { %v1434_v4 = vpop.f32.mrb[16].mxu0 }
 0x26d   :  { %v1570_v6 = vmul.f32 2.0, %v1434_v4  ;;  %v1910_v7 = vpop.f32.mrb[17].mxu0 }
 0x26e   :  { %v1437_v8 = vpop.f32.mrb[18].mxu0 }
 0x26f   :  { %v1572_v10 = vsub.f32 %v1568_v5, %v1570_v6  ;;  %v1571_v11 = vmul.f32 2.0, %v1437_v8  ;;  %v1911_v12 = vpop.f32.mrb[19].mxu0 }
 0x271   :  { %v1574_v13 = vmax.f32 %v1572_v10, 0.0  ;;  %v1573_v14 = vsub.f32 %v1569_v9, %v1571_v11 }
 0x273   :  { %v1576_v15 = vadd.f32 1.0, %v1574_v13  ;;  %v1575_v16 = vmax.f32 %v1573_v14, 0.0 }
 0x275   :  { %2098 = vrcp.f32 %v1576_v15  ;;  %v1577_v17 = vadd.f32 1.0, %v1575_v16 }
 0x277   :  { %2100 = vrcp.f32 %v1577_v17 }
 0x27f   :  { %v2099_v18 = vpop.eup %2098 }
 0x280   :  { %1582 = vadd.xlane.f32.xlu1 %v2099_v18 }
 0x281   :  { %v2101_v19 = vpop.eup %2100 }
 0x284   :  { %1584 = vadd.xlane.f32.xlu1 %v2101_v19 }
 0x285   :  { %2183 = shalt.err (!%p2180_p0)
}
 0x286   :  { %s2184_s1 = scalar_lea.hbm %s2410_s7, 256 }
 0x287   :  { %p2185_p1 = scmp.ne.s32.totalorder %s2410_s7, %s2184_s1  ;;  %p2188_p2 = scmp.lt.u32.totalorder %s2184_s1, %s2410_s7 }
 0x289   :  { %p2190_p3 = pnand %p2188_p2, %p2185_p1 }
 0x28b   :  { %2193 = shalt.err (!%p2190_p3)
}
 0x28c   :  { %s2258_s11 = smov 128   ;;  %s2259_s12 = smov 8  }
 0x28d   :  { %1615 = dma.vmem_to_hbm [thread:$0]  %s1610_s25, 256, %s2410_s7, [#allocation10], %s2258_s11, %s2258_s11, %s2259_s12  }
 0x28e   :  { %s2260_s16 = smov [#allocation11]  }
 0x28f   :  { %s1621_s17 = sshll.u32 %s2260_s16, 4  ;;  %s1622_s17 = int_to_ptr.vmem [resolvable:$true] %s1621_s17 }
 0x290   :  { %s2194_s18 = scalar_lea.vmem %s1622_s17, 1024  ;;  %p2199_p5 = scmp.lt.s32.totalorder %s1622_s17, %s1622_s17 }
 0x291   :  { %p2195_p4 = scmp.ne.s32.totalorder %s1622_s17, %s2194_s18  ;;  %p2200_p6 = scmp.lt.s32.totalorder %s2194_s18, %s2194_s18 }
 0x293   :  { %p2201_p7 = por %p2200_p6, %p2199_p5 }
 0x295   :  { %p2202_p8 = pnand %p2201_p7, %p2195_p4 }
 0x297   :  { %2205 = shalt.err (!%p2202_p8)
}
 0x298   :  { %s2206_s15 = scalar_lea.hbm %s2411_s8, 1024 }
 0x299   :  { %p2207_p9 = scmp.ne.s32.totalorder %s2411_s8, %s2206_s15  ;;  %p2210_p10 = scmp.lt.u32.totalorder %s2206_s15, %s2411_s8 }
 0x29b   :  { %p2212_p11 = pnand %p2210_p10, %p2207_p9 }
 0x29d   :  { %2215 = shalt.err (!%p2212_p11)
}
 0x29e   :  { %s2261_s22 = smov 512   ;;  %s2262_s2 = smov 32  }
 0x29f   :  { %1627 = dma.vmem_to_hbm [thread:$0]  %s1622_s17, 1024, %s2411_s8, [#allocation10], %s2261_s22, %s2261_s22, %s2262_s2  }
 0x2a0   :  { %s2263_s24 = smov [#allocation8]  }
 0x2a1   :  { %s1597_s5 = sshll.u32 %s2263_s24, 4  ;;  %s1598_s5 = int_to_ptr.vmem [resolvable:$true] %s1597_s5 }
 0x2a2   :  { %s2216_s25 = scalar_lea.vmem %s1598_s5, 256  ;;  %p2221_p13 = scmp.lt.s32.totalorder %s1598_s5, %s1598_s5 }
 0x2a3   :  { %p2217_p12 = scmp.ne.s32.totalorder %s1598_s5, %s2216_s25  ;;  %p2222_p0 = scmp.lt.s32.totalorder %s2216_s25, %s2216_s25 }
 0x2a5   :  { %p2223_p1 = por %p2222_p0, %p2221_p13 }
 0x2a7   :  { %p2224_p2 = pnand %p2223_p1, %p2217_p12 }
 0x30d   :  { %v1583_v20 = vpop.xlane.xlu1 %1582 }
 0x30e   :  { %2102 = vrcp.f32 %v1583_v20 }
 0x311   :  { %v1585_v21 = vpop.xlane.xlu1 %1584 }
 0x312   :  { %2104 = vrcp.f32 %v1585_v21 }
 0x318   :  { %v2103_v22 = vpop.eup %2102 }
 0x319   :  { %v1588_v23 = vmul.f32 %v2103_v22, %v2099_v18 }
 0x31b   :  { %1590 = vst [vmem:[#allocation8] sm:$0xff] %v1588_v23 }
 0x31c   :  { %v2105_v24 = vpop.eup %2104 }
 0x31d   :  { %v1589_v25 = vmul.f32 %v2105_v24, %v2101_v19 }
 0x31f   :  { %1591 = vst [vmem:[#allocation8 + $0x8] sm:$0xff] %v1589_v25 }
 0x320   :  { %2227 = shalt.err (!%p2224_p2)
}
 0x321   :  { %s2228_s27 = scalar_lea.hbm %s2409_s6, 256 }
 0x322   :  { %p2229_p3 = scmp.ne.s32.totalorder %s2409_s6, %s2228_s27  ;;  %p2232_p4 = scmp.lt.u32.totalorder %s2228_s27, %s2409_s6 }
 0x324   :  { %p2234_p5 = pnand %p2232_p4, %p2229_p3 }
 0x326   :  { %2237 = shalt.err (!%p2234_p5)
}
 0x327   :  { %1603 = dma.vmem_to_hbm [thread:$0]  %s1598_s5, 256, %s2409_s6, [#allocation4], %s2258_s11, %s2258_s11, %s2259_s12  }
 0x328   :  { %2242 = dma.done.wait [#allocation4], 256  }
 0x329   :  { %2243 = vsyncadd [#allocation4], 4294967040 }
 0x32a   :  { %2244 = dma.done.wait [#allocation10], 1280  }
 0x32b   :  { %2245 = vsyncadd [#allocation10], 4294966016 }
 0x32c   :  { %1637 = vsyncpa [#allocation3], 1 }
 0x32d   :  { %1638 = vsyncpa [#allocation6], 1 }
 0x32e   :  { %1639 = vsyncpa [#allocation4], 1 }
 0x32f   :  { %1640 = vsyncpa [#allocation10], 1 }

</bundles_post_ra>
